<compile_context>
chip_gen: v5e
topology: v5e:2x2
jax: 0.10.0
libtpu: 0.0.40
codegen_flags: <defaults>
</compile_context>

<pallas_src>
import functools

import jax
import jax.numpy as jnp
from jax.experimental import pallas as pl
from jax.experimental.pallas import tpu as pltpu

LN_EPS = 1e-5  # nn.LayerNorm default


def _round_up(x, m):
    return (x + m - 1) // m * m


def _layer_norm_core(h):
    """LayerNorm without affine (affine is folded into the next Linear).

    Single-pass statistics: var = E[h^2] - mean^2. Post-ReLU f32 magnitudes
    make the cancellation risk negligible, and the two cross-lane reductions
    are independent (pipeline through the XLU) instead of serialized.
    """
    n = h.shape[-1]
    inv_n = 1.0 / float(n)
    s = jnp.sum(h, axis=-1, keepdims=True)
    ss = jnp.sum(h * h, axis=-1, keepdims=True)
    mean = s * inv_n
    var = ss * inv_n - mean * mean
    inv = jax.lax.rsqrt(var + LN_EPS)
    return (h - mean) * inv


def actor_kernel(
    x_ref,
    w1_ref, b1_ref,
    w2_ref, b2_ref,
    w3_ref, b3_ref,
    o_ref,
    *,
    action_limit,
):
    # bf16 operands feed the MXU; accumulation + all VPU/EUP math in f32.
    x = x_ref[...].astype(jnp.bfloat16)

    # Layer 1: Linear -> ReLU -> LayerNorm (affine already folded into w2/b2)
    h = jnp.dot(x, w1_ref[...], preferred_element_type=jnp.float32) + b1_ref[...]
    h = jnp.maximum(h, 0.0)
    h = _layer_norm_core(h)

    # Layer 2: Linear -> ReLU -> LayerNorm (affine already folded into w3/b3)
    h = jnp.dot(h.astype(jnp.bfloat16), w2_ref[...],
                preferred_element_type=jnp.float32) + b2_ref[...]
    h = jnp.maximum(h, 0.0)
    h = _layer_norm_core(h)

    # Output layer (lane-padded to 128): Linear -> Tanh -> scale. Padded
    # columns are exactly zero (zero weights + zero bias -> tanh(0) == 0).
    h = jnp.dot(h.astype(jnp.bfloat16), w3_ref[...],
                preferred_element_type=jnp.float32) + b3_ref[...]
    o_ref[...] = (jnp.tanh(h) * action_limit).astype(o_ref.dtype)


def _batch_spec(tb, feat):
    # Tile along batch; feature axis is the full array extent.
    return pl.BlockSpec((tb, feat), lambda i: (i, 0))


def _resident_spec(shape):
    # Full-extent block, constant index map: the weight tile stays resident
    # in VMEM across the whole batch grid (single DMA). `shape` is bound as a
    # function argument, so no late-binding closure bug.
    return pl.BlockSpec(shape, lambda i: (0,) * len(shape))


def actor_forward(x, params, action_limit, *, block_b=256):
    """x: (B, num_states) float32. Returns (B, num_actions) float32."""
    B, S = x.shape
    H1 = params["w1"].shape[1]
    H2 = params["w2"].shape[1]
    A = params["w3"].shape[1]

    # ---- parameter prep (pure JAX, outside the kernel) ---------------------
    # Fold LayerNorm affine into the following Linear (exact in f32):
    #   (norm(h)*g + be) @ W + b  ==  norm(h) @ (g.T * W) + (be @ W + b)
    w2f = params["g1"].reshape(H1, 1) * params["w2"]
    b2f = params["b2"] + params["be1"] @ params["w2"]
    w3f = params["g2"].reshape(H2, 1) * params["w3"]
    b3f = params["b3"] + params["be2"] @ params["w3"]

    # Lane-dense output: pad the final Linear to a multiple of 128 lanes so
    # stores are unmasked vst and the MXU fills full output columns.
    A_pad = max(128, _round_up(A, 128))
    w3p = jnp.zeros((H2, A_pad), jnp.float32).at[:, :A].set(w3f)
    b3p = jnp.zeros((1, A_pad), jnp.float32).at[:, :A].set(b3f)

    # bf16 weights for the MXU; biases stay f32 (added post-accumulation).
    w1 = params["w1"].astype(jnp.bfloat16)
    w2 = w2f.astype(jnp.bfloat16)
    w3 = w3p.astype(jnp.bfloat16)
    b1, b2, b3 = params["b1"], b2f, b3p

    # ---- batch tiling -------------------------------------------------------
    # Small batch: single full-extent block. Larger batches: tile at block_b,
    # but cap so there are always >= 2 grid steps (v7x megacore sharding).
    tb = B if B <= block_b else block_b
    if B > 256:
        tb = min(tb, _round_up(pl.cdiv(B, 2), 8))
    grid = (pl.cdiv(B, tb),)

    weight_args = (w1, b1, w2, b2, w3, b3)
    in_specs = [_batch_spec(tb, S)] + [_resident_spec(a.shape) for a in weight_args]
    out_spec = _batch_spec(tb, A_pad)

    kernel = functools.partial(actor_kernel, action_limit=float(action_limit))

    out = pl.pallas_call(
        kernel,
        grid=grid,
        in_specs=in_specs,
        out_specs=out_spec,
        out_shape=jax.ShapeDtypeStruct((B, A_pad), jnp.float32),
        compiler_params=pltpu.CompilerParams(
            # Batch axis is independent work: lets v7x's 2 TCs split it;
            # harmless (no-op) on v5e/v6e.
            dimension_semantics=("parallel",),
        ),
    )(x, *weight_args)
    return out[:, :A]


def init_params(key, num_states, num_hiddens, num_actions):
    h1, h2 = num_hiddens
    ks = jax.random.split(key, 10)

    def lin(kw, kb, fan_in, fan_out):
        # Deterministic synthetic init (Kaiming-uniform-ish bound like nn.Linear)
        bound = 1.0 / jnp.sqrt(jnp.float32(fan_in))
        w = jax.random.uniform(kw, (fan_in, fan_out), jnp.float32, -bound, bound)
        b = jax.random.uniform(kb, (1, fan_out), jnp.float32, -bound, bound)
        return w, b

    w1, b1 = lin(ks[0], ks[1], num_states, h1)
    w2, b2 = lin(ks[2], ks[3], h1, h2)
    w3, b3 = lin(ks[4], ks[5], h2, num_actions)
    # Non-trivial LN affine so the fold-into-next-Linear path is exercised.
    g1 = 1.0 + 0.1 * jax.random.normal(ks[6], (1, h1), jnp.float32)
    be1 = 0.1 * jax.random.normal(ks[7], (1, h1), jnp.float32)
    g2 = 1.0 + 0.1 * jax.random.normal(ks[8], (1, h2), jnp.float32)
    be2 = 0.1 * jax.random.normal(ks[9], (1, h2), jnp.float32)
    return {
        "w1": w1, "b1": b1, "g1": g1, "be1": be1,
        "w2": w2, "b2": b2, "g2": g2, "be2": be2,
        "w3": w3, "b3": b3,
    }


def _layer_norm_ref(h, gamma, beta):
    # PyTorch LayerNorm: population variance, eps inside rsqrt, affine applied.
    mean = jnp.mean(h, axis=-1, keepdims=True)
    var = jnp.mean((h - mean) ** 2, axis=-1, keepdims=True)
    return (h - mean) * jax.lax.rsqrt(var + LN_EPS) * gamma + beta


def actor_reference(x, params, action_limit):
    h = x @ params["w1"] + params["b1"]
    h = jnp.maximum(h, 0.0)
    h = _layer_norm_ref(h, params["g1"], params["be1"])
    h = h @ params["w2"] + params["b2"]
    h = jnp.maximum(h, 0.0)
    h = _layer_norm_ref(h, params["g2"], params["be2"])
    h = h @ params["w3"] + params["b3"]
    return jnp.tanh(h) * action_limit


if __name__ == "__main__":
    num_states = 32
    num_actions = 8
    num_hiddens = (128, 128)
    action_limit = 2.0

    key = jax.random.PRNGKey(0)
    k_x, k_p, k_xb = jax.random.split(key, 3)
    params = init_params(k_p, num_states, num_hiddens, num_actions)

    # bf16 MXU operands => loosened tolerance vs the f32 reference.
    ATOL = RTOL = 3e-2

    # Case 1: tiny batch (single full-extent block), matches module usage.
    x_small = jax.random.normal(k_x, (8, num_states), jnp.float32)
    out_s = jax.block_until_ready(actor_forward(x_small, params, action_limit))
    ref_s = actor_reference(x_small, params, action_limit)
    assert out_s.shape == (8, num_actions)
    assert jnp.allclose(out_s, ref_s, atol=ATOL, rtol=RTOL), "small-batch mismatch"

    # Case 2: large batch exercising the batch grid (>=2 steps, resident
    # weights, pipelined x tiles, parallel axis for megacore).
    x_big = jax.random.normal(k_xb, (1024, num_states), jnp.float32)
    out_b = jax.block_until_ready(
        actor_forward(x_big, params, action_limit, block_b=256))
    ref_b = actor_reference(x_big, params, action_limit)
    assert out_b.shape == (1024, num_actions)
    assert jnp.allclose(out_b, ref_b, atol=ATOL, rtol=RTOL), "batched mismatch"

    # TODO(synk): nn.Dropout path (drop_rate) not implemented — inference forward only.
    print("KERNEL_OK")
</pallas_src>

<mosaic_0001>
module attributes {stable_mosaic.version = 11 : i64} {
  func.func @actor_kernel(%arg0: i32, %arg1: memref<8x32xf32, #tpu.memory_space<vmem>>, %arg2: memref<32x128xbf16, #tpu.memory_space<vmem>>, %arg3: memref<1x128xf32, #tpu.memory_space<vmem>>, %arg4: memref<128x128xbf16, #tpu.memory_space<vmem>>, %arg5: memref<1x128xf32, #tpu.memory_space<vmem>>, %arg6: memref<128x128xbf16, #tpu.memory_space<vmem>>, %arg7: memref<1x128xf32, #tpu.memory_space<vmem>>, %arg8: memref<8x128xf32, #tpu.memory_space<vmem>>) attributes {dimension_semantics = [#tpu.dimension_semantics<parallel>], iteration_bounds = array<i64: 1>, scalar_prefetch = 0 : i64, scratch_operands = 0 : i64, tpu.core_type = #tpu.core_type<tc>, window_params = [{transform_indices = @transform_0, window_bounds = array<i64: 8, 32>}, {pipeline_mode = #tpu.pipeline_mode<synchronous>, transform_indices = @transform_1, window_bounds = array<i64: 32, 128>}, {pipeline_mode = #tpu.pipeline_mode<synchronous>, transform_indices = @transform_2, window_bounds = array<i64: 1, 128>}, {pipeline_mode = #tpu.pipeline_mode<synchronous>, transform_indices = @transform_3, window_bounds = array<i64: 128, 128>}, {pipeline_mode = #tpu.pipeline_mode<synchronous>, transform_indices = @transform_4, window_bounds = array<i64: 1, 128>}, {pipeline_mode = #tpu.pipeline_mode<synchronous>, transform_indices = @transform_5, window_bounds = array<i64: 128, 128>}, {pipeline_mode = #tpu.pipeline_mode<synchronous>, transform_indices = @transform_6, window_bounds = array<i64: 1, 128>}, {transform_indices = @transform_7, window_bounds = array<i64: 8, 128>}]} {
    %c0 = arith.constant 0 : index
    %c0_0 = arith.constant 0 : index
    %0 = vector.load %arg1[%c0, %c0_0] : memref<8x32xf32, #tpu.memory_space<vmem>>, vector<8x32xf32>
    %1 = arith.truncf %0 : vector<8x32xf32> to vector<8x32xbf16>
    %c0_1 = arith.constant 0 : index
    %c0_2 = arith.constant 0 : index
    %2 = vector.load %arg2[%c0_1, %c0_2] : memref<32x128xbf16, #tpu.memory_space<vmem>>, vector<32x128xbf16>
    %cst = arith.constant dense<0.000000e+00> : vector<8x128xf32>
    %3 = tpu.matmul %1, %2, %cst {dimension_numbers = #tpu.dot_dimension_numbers<[1], [0], [0], [1], [0, 0, 1, 1], [], []>} : vector<8x32xbf16>, vector<32x128xbf16>, vector<8x128xf32> -> vector<8x128xf32>
    %c0_3 = arith.constant 0 : index
    %c0_4 = arith.constant 0 : index
    %4 = vector.load %arg3[%c0_3, %c0_4] : memref<1x128xf32, #tpu.memory_space<vmem>>, vector<1x128xf32>
    %5 = vector.broadcast %4 : vector<1x128xf32> to vector<8x128xf32>
    %6 = arith.addf %3, %5 : vector<8x128xf32>
    %cst_5 = arith.constant 0.000000e+00 : f32
    %7 = vector.broadcast %cst_5 : f32 to vector<8x128xf32>
    %8 = arith.maximumf %6, %7 : vector<8x128xf32>
    %cst_6 = arith.constant dense<0.000000e+00> : vector<8xf32>
    %9 = vector.multi_reduction <add>, %8, %cst_6 [1] : vector<8x128xf32> to vector<8xf32>
    %10 = vector.shape_cast %9 : vector<8xf32> to vector<8x1xf32>
    %11 = arith.mulf %8, %8 : vector<8x128xf32>
    %cst_7 = arith.constant dense<0.000000e+00> : vector<8xf32>
    %12 = vector.multi_reduction <add>, %11, %cst_7 [1] : vector<8x128xf32> to vector<8xf32>
    %13 = vector.shape_cast %12 : vector<8xf32> to vector<8x1xf32>
    %cst_8 = arith.constant 7.812500e-03 : f32
    %14 = vector.broadcast %cst_8 : f32 to vector<8x1xf32>
    %15 = arith.mulf %10, %14 : vector<8x1xf32>
    %cst_9 = arith.constant 7.812500e-03 : f32
    %16 = vector.broadcast %cst_9 : f32 to vector<8x1xf32>
    %17 = arith.mulf %13, %16 : vector<8x1xf32>
    %18 = arith.mulf %15, %15 : vector<8x1xf32>
    %19 = arith.subf %17, %18 : vector<8x1xf32>
    %cst_10 = arith.constant 9.99999974E-6 : f32
    %20 = vector.broadcast %cst_10 : f32 to vector<8x1xf32>
    %21 = arith.addf %19, %20 : vector<8x1xf32>
    %22 = math.rsqrt %21 : vector<8x1xf32>
    %23 = vector.broadcast %15 : vector<8x1xf32> to vector<8x128xf32>
    %24 = arith.subf %8, %23 : vector<8x128xf32>
    %25 = vector.broadcast %22 : vector<8x1xf32> to vector<8x128xf32>
    %26 = arith.mulf %24, %25 : vector<8x128xf32>
    %27 = arith.truncf %26 : vector<8x128xf32> to vector<8x128xbf16>
    %c0_11 = arith.constant 0 : index
    %c0_12 = arith.constant 0 : index
    %28 = vector.load %arg4[%c0_11, %c0_12] : memref<128x128xbf16, #tpu.memory_space<vmem>>, vector<128x128xbf16>
    %cst_13 = arith.constant dense<0.000000e+00> : vector<8x128xf32>
    %29 = tpu.matmul %27, %28, %cst_13 {dimension_numbers = #tpu.dot_dimension_numbers<[1], [0], [0], [1], [0, 0, 1, 1], [], []>} : vector<8x128xbf16>, vector<128x128xbf16>, vector<8x128xf32> -> vector<8x128xf32>
    %c0_14 = arith.constant 0 : index
    %c0_15 = arith.constant 0 : index
    %30 = vector.load %arg5[%c0_14, %c0_15] : memref<1x128xf32, #tpu.memory_space<vmem>>, vector<1x128xf32>
    %31 = vector.broadcast %30 : vector<1x128xf32> to vector<8x128xf32>
    %32 = arith.addf %29, %31 : vector<8x128xf32>
    %cst_16 = arith.constant 0.000000e+00 : f32
    %33 = vector.broadcast %cst_16 : f32 to vector<8x128xf32>
    %34 = arith.maximumf %32, %33 : vector<8x128xf32>
    %cst_17 = arith.constant dense<0.000000e+00> : vector<8xf32>
    %35 = vector.multi_reduction <add>, %34, %cst_17 [1] : vector<8x128xf32> to vector<8xf32>
    %36 = vector.shape_cast %35 : vector<8xf32> to vector<8x1xf32>
    %37 = arith.mulf %34, %34 : vector<8x128xf32>
    %cst_18 = arith.constant dense<0.000000e+00> : vector<8xf32>
    %38 = vector.multi_reduction <add>, %37, %cst_18 [1] : vector<8x128xf32> to vector<8xf32>
    %39 = vector.shape_cast %38 : vector<8xf32> to vector<8x1xf32>
    %cst_19 = arith.constant 7.812500e-03 : f32
    %40 = vector.broadcast %cst_19 : f32 to vector<8x1xf32>
    %41 = arith.mulf %36, %40 : vector<8x1xf32>
    %cst_20 = arith.constant 7.812500e-03 : f32
    %42 = vector.broadcast %cst_20 : f32 to vector<8x1xf32>
    %43 = arith.mulf %39, %42 : vector<8x1xf32>
    %44 = arith.mulf %41, %41 : vector<8x1xf32>
    %45 = arith.subf %43, %44 : vector<8x1xf32>
    %cst_21 = arith.constant 9.99999974E-6 : f32
    %46 = vector.broadcast %cst_21 : f32 to vector<8x1xf32>
    %47 = arith.addf %45, %46 : vector<8x1xf32>
    %48 = math.rsqrt %47 : vector<8x1xf32>
    %49 = vector.broadcast %41 : vector<8x1xf32> to vector<8x128xf32>
    %50 = arith.subf %34, %49 : vector<8x128xf32>
    %51 = vector.broadcast %48 : vector<8x1xf32> to vector<8x128xf32>
    %52 = arith.mulf %50, %51 : vector<8x128xf32>
    %53 = arith.truncf %52 : vector<8x128xf32> to vector<8x128xbf16>
    %c0_22 = arith.constant 0 : index
    %c0_23 = arith.constant 0 : index
    %54 = vector.load %arg6[%c0_22, %c0_23] : memref<128x128xbf16, #tpu.memory_space<vmem>>, vector<128x128xbf16>
    %cst_24 = arith.constant dense<0.000000e+00> : vector<8x128xf32>
    %55 = tpu.matmul %53, %54, %cst_24 {dimension_numbers = #tpu.dot_dimension_numbers<[1], [0], [0], [1], [0, 0, 1, 1], [], []>} : vector<8x128xbf16>, vector<128x128xbf16>, vector<8x128xf32> -> vector<8x128xf32>
    %c0_25 = arith.constant 0 : index
    %c0_26 = arith.constant 0 : index
    %56 = vector.load %arg7[%c0_25, %c0_26] : memref<1x128xf32, #tpu.memory_space<vmem>>, vector<1x128xf32>
    %57 = vector.broadcast %56 : vector<1x128xf32> to vector<8x128xf32>
    %58 = arith.addf %55, %57 : vector<8x128xf32>
    %59 = math.tanh %58 : vector<8x128xf32>
    %cst_27 = arith.constant 2.000000e+00 : f32
    %60 = vector.broadcast %cst_27 : f32 to vector<8x128xf32>
    %61 = arith.mulf %59, %60 : vector<8x128xf32>
    %c0_28 = arith.constant 0 : index
    %c0_29 = arith.constant 0 : index
    %62 = vector.load %arg8[%c0_28, %c0_29] : memref<8x128xf32, #tpu.memory_space<vmem>>, vector<8x128xf32>
    tpu.vector_store %arg8[%c0_28, %c0_29], %61 {strides = array<i32>} : memref<8x128xf32, #tpu.memory_space<vmem>>, vector<8x128xf32>,
    return
  }
  func.func @transform_0(%arg0: i32) -> (i32, i32) {
    %c0_i32 = arith.constant 0 : i32
    %c0_i32_0 = arith.constant 0 : i32
    return %arg0, %c0_i32 : i32, i32
  }
  func.func @transform_1(%arg0: i32) -> (i32, i32) {
    %c0_i32 = arith.constant 0 : i32
    %c0_i32_0 = arith.constant 0 : i32
    %c0_i32_1 = arith.constant 0 : i32
    return %c0_i32, %c0_i32_0 : i32, i32
  }
  func.func @transform_2(%arg0: i32) -> (i32, i32) {
    %c0_i32 = arith.constant 0 : i32
    %c0_i32_0 = arith.constant 0 : i32
    %c0_i32_1 = arith.constant 0 : i32
    return %c0_i32, %c0_i32_0 : i32, i32
  }
  func.func @transform_3(%arg0: i32) -> (i32, i32) {
    %c0_i32 = arith.constant 0 : i32
    %c0_i32_0 = arith.constant 0 : i32
    %c0_i32_1 = arith.constant 0 : i32
    return %c0_i32, %c0_i32_0 : i32, i32
  }
  func.func @transform_4(%arg0: i32) -> (i32, i32) {
    %c0_i32 = arith.constant 0 : i32
    %c0_i32_0 = arith.constant 0 : i32
    %c0_i32_1 = arith.constant 0 : i32
    return %c0_i32, %c0_i32_0 : i32, i32
  }
  func.func @transform_5(%arg0: i32) -> (i32, i32) {
    %c0_i32 = arith.constant 0 : i32
    %c0_i32_0 = arith.constant 0 : i32
    %c0_i32_1 = arith.constant 0 : i32
    return %c0_i32, %c0_i32_0 : i32, i32
  }
  func.func @transform_6(%arg0: i32) -> (i32, i32) {
    %c0_i32 = arith.constant 0 : i32
    %c0_i32_0 = arith.constant 0 : i32
    %c0_i32_1 = arith.constant 0 : i32
    return %c0_i32, %c0_i32_0 : i32, i32
  }
  func.func @transform_7(%arg0: i32) -> (i32, i32) {
    %c0_i32 = arith.constant 0 : i32
    %c0_i32_0 = arith.constant 0 : i32
    return %arg0, %c0_i32 : i32, i32
  }
}

</mosaic_0001>

<bundles_post_ra>
// kernel: tpu_custom_call.1
= control target key start
LH: loop header
LB: loop body
LE: loop exit
PB: predicated region body
PF: predicated region fallthrough
CT: control target
= control target key end

     0   :  { %12 = vsyncpa [#allocation3], 0  ;;  %s666_s0 = inlined_call_operand.hbm [shape: f32[8,32], index: 0, kind: input, shape index: {}]   ;;  %s667_s1 = inlined_call_operand.hbm [shape: bf16[32,128], index: 1, kind: input, shape index: {}]   ;;  %s668_s2 = inlined_call_operand.vmem [shape: f32[1,128], index: 2, kind: input, shape index: {}]   ;;  %s669_s3 = inlined_call_operand.hbm [shape: bf16[128,128], index: 3, kind: input, shape index: {}]   ;;  %s670_s4 = inlined_call_operand.vmem [shape: f32[1,128], index: 4, kind: input, shape index: {}]   ;;  %s671_s5 = inlined_call_operand.hbm [shape: bf16[128,128], index: 5, kind: input, shape index: {}]   ;;  %s672_s6 = inlined_call_operand.vmem [shape: f32[1,128], index: 6, kind: input, shape index: {}]   ;;  %s673_s7 = inlined_call_operand.hbm [shape: f32[8,128], index: 7, kind: output, shape index: {}]  }
   0x1   :  { %13 = vsyncpa [#allocation6], 0 }
   0x2   :  { %14 = vsyncpa [#allocation9], 0  ;;  %s31_s26 = sshll.u32 %s667_s1, 4  ;;  %s32_s26 = int_to_ptr.hbm [resolvable:$true] %s31_s26 }
   0x3   :  { %15 = vsyncpa [#allocation4], 0  ;;  %s595_s27 = smov [#allocation5]   ;;  %s21_s8 = sshll.u32 %s666_s0, 4  ;;  %s22_s8 = int_to_ptr.hbm [resolvable:$true] %s21_s8 }
   0x4   :  { %s33_s28 = sshll.u32 %s595_s27, 4  ;;  %s596_s9 = smov 64   ;;  %s34_s28 = int_to_ptr.vmem [resolvable:$true] %s33_s28 }
   0x5   :  { %s597_s10 = smov 4   ;;  %s598_s11 = smov [#allocation2]  }
   0x6   :  { %39 = dma.hbm_to_vmem [thread:$0]  %s32_s26, 256, %s34_s28, [#allocation6], %s596_s9, %s596_s9, %s597_s10  }
   0x7   :  { %s23_s12 = sshll.u32 %s598_s11, 4  ;;  %s46_s15 = sshll.u32 %s669_s3, 4  ;;  %s24_s12 = int_to_ptr.vmem [resolvable:$true] %s23_s12  ;;  %s47_s15 = int_to_ptr.hbm [resolvable:$true] %s46_s15 }
   0x8   :  { %26 = dma.hbm_to_vmem [thread:$0]  %s22_s8, 128, %s24_s12, [#allocation3]  }
   0x9   :  { %s61_s17 = sshll.u32 %s671_s5, 4  ;;  %s599_s18 = smov [#allocation7]   ;;  %s62_s17 = int_to_ptr.hbm [resolvable:$true] %s61_s17 }
   0xa   :  { %s48_s19 = sshll.u32 %s599_s18, 4  ;;  %s600_s0 = smov [#allocation8]   ;;  %s49_s19 = int_to_ptr.vmem [resolvable:$true] %s48_s19 }
   0xb   :  { %54 = dma.hbm_to_vmem [thread:$0]  %s47_s15, 1024, %s49_s19, [#allocation6], %s596_s9, %s596_s9, %s597_s10  }
   0xc   :  { %s63_s20 = sshll.u32 %s600_s0, 4  ;;  %s64_s20 = int_to_ptr.vmem [resolvable:$true] %s63_s20 }
   0xd   :  { %69 = dma.hbm_to_vmem [thread:$0]  %s62_s17, 1024, %s64_s20, [#allocation9], %s596_s9, %s596_s9, %s597_s10  }
   0xe   :  { %587 = dma.done.wait [#allocation3], 128  }
   0xf   :  { %588 = vsyncadd [#allocation3], 4294967168 }
  0x10   :  { %589 = dma.done.wait [#allocation6], 1280  }
  0x11   :  { %590 = vsyncadd [#allocation6], 4294966016 }
  0x12   :  { %591 = dma.done.wait [#allocation9], 1024  }
  0x13   :  { %592 = vsyncadd [#allocation9], 4294966272  ;;  %v434_v0 = vld [vmem:[#allocation5 + $0x8] sm:$0xff]  ;;  %v433_v1 = vld [vmem:[#allocation5] sm:$0xff]  ;;  %vm111_vm0 = vcmask 261120   ;;  %s601_s23 = smov [#allocation10]  }
  0x14   :  { %121 = vmatpush.bf16.msra.mxu0 %v434_v0  ;;  %v89_v2 = vld [vmem:[#allocation2] sm:$0xff]  ;;  %v442_v10 = vld [vmem:[#allocation7 + $0x38] sm:$0xff]  ;;  %v441_v11 = vld [vmem:[#allocation7 + $0x30] sm:$0xff]  ;;  %s346_s24 = sshll.u32 %s601_s23, 4  ;;  %s348_s27 = sshll.u32 %s673_s7, 4  ;;  %s347_s24 = int_to_ptr.vmem [resolvable:$true] %s346_s24  ;;  %s349_s27 = int_to_ptr.hbm [resolvable:$true] %s348_s27 }
  0x15   :  { %v90_v3 = vpack.c.bf16 %v89_v2, %v89_v2  ;;  %v458_v4 = vld [vmem:[%s668_s2] ss:$0 sm:$0xff]  ;;  %220 = vmatpush.bf16.msra.mxu1 %v442_v10  ;;  %v439_v13 = vld [vmem:[#allocation7 + $0x20] sm:$0xff]  ;;  %v438_v14 = vld [vmem:[#allocation7 + $0x18] sm:$0xff] }
  0x16   :  { %v440_v12 = vld [vmem:[#allocation7 + $0x28] sm:$0xff]  ;;  %v437_v15 = vld [vmem:[#allocation7 + $0x10] sm:$0xff]  ;;  %v435_v17 = vld [vmem:[#allocation7] sm:$0xff] }
  0x17   :  { %v436_v16 = vld [vmem:[#allocation7 + $0x8] sm:$0xff]  ;;  %v450_v41 = vld [vmem:[#allocation8 + $0x38] sm:$0xff]  ;;  %v449_v42 = vld [vmem:[#allocation8 + $0x30] sm:$0xff] }
  0x18   :  { %122 = vmatpush.bf16.msra.mxu0 %v433_v1  ;;  %v459_v35 = vld [vmem:[%s670_s4] ss:$0 sm:$0xff]  ;;  %325 = vmatpush.bf16.msra.mxu2 %v450_v41  ;;  %v447_v44 = vld [vmem:[#allocation8 + $0x20] sm:$0xff]  ;;  %v446_v45 = vld [vmem:[#allocation8 + $0x18] sm:$0xff] }
  0x19   :  { %221 = vmatpush.bf16.msra.mxu1 %v441_v11  ;;  %v448_v43 = vld [vmem:[#allocation8 + $0x28] sm:$0xff]  ;;  %v445_v46 = vld [vmem:[#allocation8 + $0x10] sm:$0xff]  ;;  %v443_v48 = vld [vmem:[#allocation8] sm:$0xff] }
  0x1a   :  { %v444_v47 = vld [vmem:[#allocation8 + $0x8] sm:$0xff] }
  0x1b   :  { %368 = vmatmul.msk.bf16.vlgmr.msra.gmra.mxu0 %vm111_vm0, %v90_v3  ;;  %v460_v2 = vld [vmem:[%s672_s6] ss:$0 sm:$0xff] }
  0x1c   :  { %326 = vmatpush.bf16.msra.mxu2 %v449_v42 }
  0x1d   :  { %222 = vmatpush.bf16.msra.mxu1 %v440_v12 }
  0x20   :  { %327 = vmatpush.bf16.msra.mxu2 %v448_v43 }
  0x21   :  { %223 = vmatpush.bf16.msra.mxu1 %v439_v13 }
  0x24   :  { %328 = vmatpush.bf16.msra.mxu2 %v447_v44 }
  0x25   :  { %224 = vmatpush.bf16.msra.mxu1 %v438_v14 }
  0x28   :  { %329 = vmatpush.bf16.msra.mxu2 %v446_v45 }
  0x29   :  { %225 = vmatpush.bf16.msra.mxu1 %v437_v15 }
  0x2c   :  { %330 = vmatpush.bf16.msra.mxu2 %v445_v46 }
  0x2d   :  { %226 = vmatpush.bf16.msra.mxu1 %v436_v16 }
  0x30   :  { %331 = vmatpush.bf16.msra.mxu2 %v444_v47 }
  0x31   :  { %227 = vmatpush.bf16.msra.mxu1 %v435_v17 }
  0x34   :  { %332 = vmatpush.bf16.msra.mxu2 %v443_v48 }
  0x98   :  { %v124_v5 = vpop.f32.mrf.mxu0 }
  0x99   :  { %v125_v6 = vadd.f32 %v458_v4, %v124_v5 }
  0x9b   :  { %v128_v7 = vmax.f32 %v125_v6, 0.0 }
  0x9d   :  { %129 = vadd.xlane.f32.xlu0 %v128_v7  ;;  %v131_v9 = vmul.f32 %v128_v7, %v128_v7 }
  0xa0   :  { %v126_v8 = vpop.f32.mrf.mxu0 }
  0xa5   :  { %132 = vadd.xlane.f32.xlu0 %v131_v9 }
 0x110   :  { %v130_v18 = vpop.xlane.xlu0 %129 }
 0x111   :  { %v134_v19 = vmul.f32 0.0078125, %v130_v18 }
 0x113   :  { %v136_v21 = vmul.f32 %v134_v19, %v134_v19  ;;  %v149_v31 = vsub.f32 %v128_v7, %v134_v19 }
 0x118   :  { %v133_v20 = vpop.xlane.xlu0 %132 }
 0x119   :  { %v135_v22 = vmul.f32 0.0078125, %v133_v20 }
 0x11b   :  { %v137_v23 = vsub.f32 %v135_v22, %v136_v21 }
 0x11d   :  { %v138_v24 = vadd.f32 1e-05, %v137_v23 }
 0x11f   :  { %461 = vrsqrt.f32 %v138_v24  ;;  %vm145_vm2 = vweird.f32 %v138_v24 }
 0x125   :  { %v462_v25 = vpop.eup %461 }
 0x126   :  { %v140_v26 = vmul.f32 %v462_v25, %v138_v24  ;;  %vm146_vm1 = vweird.f32 %v462_v25 }
 0x127   :  { %vm147_vm3 = vmor %vm145_vm2, %vm146_vm1 }
 0x128   :  { %v141_v27 = vmul.f32 %v462_v25, %v140_v26 }
 0x12a   :  { %v142_v28 = vmul.f32 0.5, %v141_v27 }
 0x12c   :  { %v143_v29 = vsub.f32 1.5, %v142_v28 }
 0x12e   :  { %v144_v30 = vmul.f32 %v462_v25, %v143_v29 }
 0x130   :  { %v148_v32 = vsel %vm147_vm3, %v462_v25, %v144_v30 }
 0x131   :  { %v150_v33 = vmul.f32 %v149_v31, %v148_v32 }
 0x133   :  { %v151_v34 = vpack.c.bf16 %v150_v33, %v150_v33 }
 0x135   :  { %228 = vmatmul.bf16.vlgmr.msra.gmra.mxu1 %v151_v34 }
 0x1b2   :  { %v229_v36 = vpop.f32.mrf.mxu1 }
 0x1b3   :  { %v230_v37 = vadd.f32 %v459_v35, %v229_v36 }
 0x1b5   :  { %v233_v38 = vmax.f32 %v230_v37, 0.0 }
 0x1b7   :  { %234 = vadd.xlane.f32.xlu1 %v233_v38  ;;  %v236_v40 = vmul.f32 %v233_v38, %v233_v38 }
 0x1ba   :  { %v231_v39 = vpop.f32.mrf.mxu1 }
 0x1bf   :  { %237 = vadd.xlane.f32.xlu1 %v236_v40 }
 0x22a   :  { %v235_v49 = vpop.xlane.xlu1 %234 }
 0x22b   :  { %v239_v50 = vmul.f32 0.0078125, %v235_v49 }
 0x22d   :  { %v241_v52 = vmul.f32 %v239_v50, %v239_v50  ;;  %v254_v62 = vsub.f32 %v233_v38, %v239_v50 }
 0x232   :  { %v238_v51 = vpop.xlane.xlu1 %237 }
 0x233   :  { %v240_v53 = vmul.f32 0.0078125, %v238_v51 }
 0x235   :  { %v242_v54 = vsub.f32 %v240_v53, %v241_v52 }
 0x237   :  { %v243_v55 = vadd.f32 1e-05, %v242_v54 }
 0x239   :  { %463 = vrsqrt.f32 %v243_v55  ;;  %vm250_vm5 = vweird.f32 %v243_v55 }
 0x23f   :  { %v464_v56 = vpop.eup %463 }
 0x240   :  { %v245_v57 = vmul.f32 %v464_v56, %v243_v55  ;;  %vm251_vm4 = vweird.f32 %v464_v56 }
 0x241   :  { %vm252_vm6 = vmor %vm250_vm5, %vm251_vm4 }
 0x242   :  { %v246_v58 = vmul.f32 %v464_v56, %v245_v57 }
 0x244   :  { %v247_v59 = vmul.f32 0.5, %v246_v58 }
 0x246   :  { %v248_v60 = vsub.f32 1.5, %v247_v59 }
 0x248   :  { %v249_v61 = vmul.f32 %v464_v56, %v248_v60 }
 0x24a   :  { %v253_v63 = vsel %vm252_vm6, %v464_v56, %v249_v61 }
 0x24b   :  { %v255_v0 = vmul.f32 %v254_v62, %v253_v63 }
 0x24d   :  { %v256_v1 = vpack.c.bf16 %v255_v0, %v255_v0 }
 0x24f   :  { %333 = vmatmul.bf16.vlgmr.msra.gmra.mxu2 %v256_v1 }
 0x2d2   :  { %v334_v3 = vpop.f32.mrf.mxu2 }
 0x2d3   :  { %v335_v4 = vadd.f32 %v460_v2, %v334_v3 }
 0x2d5   :  { %465 = vtanh.f32 %v335_v4 }
 0x2da   :  { %v336_v5 = vpop.f32.mrf.mxu2 }
 0x2db   :  { %v466_v6 = vpop.eup %465 }
 0x2dc   :  { %v339_v7 = vmul.f32 2.0, %v466_v6 }
 0x2de   :  { %340 = vst [vmem:[#allocation10] sm:$0xff] %v339_v7 }
 0x2df   :  { %351 = dma.vmem_to_hbm [thread:$0]  %s347_s24, 128, %s349_s27, [#allocation4]  }
 0x2e0   :  { %593 = dma.done.wait [#allocation4], 128  }
 0x2e1   :  { %594 = vsyncadd [#allocation4], 4294967168 }
 0x2e2   :  { %356 = vsyncpa [#allocation3], 1 }
 0x2e3   :  { %357 = vsyncpa [#allocation6], 1 }
 0x2e4   :  { %358 = vsyncpa [#allocation9], 1 }
 0x2e5   :  { %359 = vsyncpa [#allocation4], 1 }

</bundles_post_ra>
